<compile_context>
chip_gen: v5e
topology: v5e:2x2
jax: 0.10.0
libtpu: 0.0.40
codegen_flags: <defaults>
</compile_context>

<pallas_src>
import jax
import jax.numpy as jnp
from jax.experimental import pallas as pl
from jax.experimental.pallas import tpu as pltpu


# --------------------------------------------------------------------------
# Kernels
# --------------------------------------------------------------------------

def _fused_linear_kernel(x_ref, w_ref, b_ref, o_ref, acc_ref):
    """out = x @ W_fused + b_fused, K-streamed with an f32 accumulator.

    Grid = (batch_tiles, k_tiles); K is the last axis ("arbitrary"), batch is
    "parallel".  The output block index is constant across K, so o_ref is the
    resident tile for this batch row-block.
    """
    k = pl.program_id(1)

    @pl.when(k == 0)
    def _():
        acc_ref[...] = jnp.zeros_like(acc_ref)

    acc_ref[...] += jnp.dot(x_ref[...], w_ref[...],
                            preferred_element_type=jnp.float32)

    @pl.when(k == pl.num_programs(1) - 1)
    def _():
        o_ref[...] = (acc_ref[...] + b_ref[...]).astype(o_ref.dtype)


def _two_linear_kernel(x_ref, w1_ref, b1_ref, w2_ref, b2_ref, o_ref, hid_ref):
    """out = (x @ w1 + b1) @ w2 + b2, with x@w1 accumulated over K tiles.

    Used when out_features is wide enough that fusing w1@w2 would blow up the
    weight footprint.  hid_ref is a tiny (tb, 5) f32 scratch; w2/b2 are tiny
    and stay resident.
    """
    k = pl.program_id(1)

    @pl.when(k == 0)
    def _():
        hid_ref[...] = jnp.zeros_like(hid_ref)

    hid_ref[...] += jnp.dot(x_ref[...], w1_ref[...],
                            preferred_element_type=jnp.float32)

    @pl.when(k == pl.num_programs(1) - 1)
    def _():
        hidden = hid_ref[...] + b1_ref[...]
        o_ref[...] = (jnp.dot(hidden, w2_ref[...],
                              preferred_element_type=jnp.float32)
                      + b2_ref[...]).astype(o_ref.dtype)


# --------------------------------------------------------------------------
# Tile sizing / VMEM budget
# --------------------------------------------------------------------------

def _round_down(x, m):
    return (x // m) * m


def _round_up(x, m):
    return ((x + m - 1) // m) * m


def _vmem_budget_bytes():
    """Per-generation scoped-VMEM budget: half of physical VMEM.

    v5e/v6e: 128 MiB physical -> 64 MiB budget; v7x: 64 MiB -> 32 MiB.
    Falls back to a conservative 32 MiB if the query is unavailable.
    """
    try:
        cap = int(pltpu.get_tpu_info().vmem_capacity_bytes)
        return max(16 * 1024 * 1024, cap // 2)
    except Exception:
        return 32 * 1024 * 1024


def _choose_tiles(B, F, w_cols, out_cols, itemsize, budget):
    """Derive (tb, tk) so every pipelined buffer fits in `budget` bytes.

    w_cols   : lane width of the K-streamed weight slab.
    out_cols : lane width of the kernel output / f32 accumulator.

    Accounting assumes Pallas' default double-buffering of every BlockSpec
    operand (inputs AND output) and lane padding to multiples of 128:
        x      : 2 * tb * tk      * itemsize
        weight : 2 * tk * w_lanes * itemsize
        bias   : 2 * 1  * lanes   * itemsize      (negligible)
        out    : 2 * tb * o_lanes * itemsize
        f32 acc: 1 * tb * o_lanes * 4
    """
    w_lanes = _round_up(max(w_cols, 1), 128)
    o_lanes = _round_up(max(out_cols, 1), 128)

    # --- K (feature) tile: keep the weight resident if both copies fit in
    #     ~half the budget, otherwise stream it in lane-aligned exact chunks.
    if 2 * F * w_lanes * itemsize <= budget // 2 or F <= 128:
        tk = F
    else:
        tk = _round_down((budget // 2) // (2 * w_lanes * itemsize), 128)
        tk = max(tk, 128)
        while tk > 128 and F % tk != 0:
            tk -= 128
        if F % tk != 0:
            # TODO(synk): pad / mask edge K blocks for F not divisible by 128.
            tk = F
    weight_bytes = 2 * tk * w_lanes * itemsize + 4 * o_lanes * itemsize

    # --- batch tile: biggest tb whose x/out buffers + f32 acc still fit.
    per_row = 2 * tk * itemsize + 2 * o_lanes * itemsize + o_lanes * 4
    remaining = max(budget - weight_bytes, 8 * per_row)
    tb = max(_round_down(remaining // per_row, 8), 8)

    if B > 8:
        # Megacore: force >= 2 batch tiles so the "parallel" axis actually
        # spans v7x's two TensorCores (one extra ~0.35 us step on v5e/v6e).
        tb = min(tb, _round_up(pl.cdiv(B, 2), 8))
        tb = min(tb, _round_up(B, 8))
    else:
        tb = B  # block dim == full array dim satisfies the (8,128) rule
    return tb, tk


# --------------------------------------------------------------------------
# Parameter prep (hoisted out of the per-call forward path)
# --------------------------------------------------------------------------

def prepare_params(w1, b1, w2, b2, *, fuse_max_out=128,
                   compute_dtype=jnp.float32):
    """One-time parameter preparation.

    w1: [F, 5], b1: [5], w2: [5, out], b2: [out]  (transpose of nn.Linear.weight).
    The two Linears have no nonlinearity between them, so for narrow heads we
    fold them algebraically:  (x@w1 + b1)@w2 + b2 == x@(w1@w2) + (b1@w2 + b2).
    For wide heads (> fuse_max_out) the fused [F, out] weight would be far
    larger than the original factors, so they are kept separate.
    """
    out_features = w2.shape[1]
    if out_features <= fuse_max_out:
        w_fused = jnp.dot(w1, w2, preferred_element_type=jnp.float32)
        b_fused = jnp.dot(b1, w2, preferred_element_type=jnp.float32) + b2
        return {
            "fused": True,
            "w": w_fused.astype(compute_dtype),
            "b": b_fused.reshape(1, -1).astype(jnp.float32),
        }
    return {
        "fused": False,
        "w1": w1.astype(compute_dtype),
        "b1": b1.reshape(1, -1).astype(jnp.float32),
        "w2": w2.astype(jnp.float32),
        "b2": b2.reshape(1, -1).astype(jnp.float32),
    }


# --------------------------------------------------------------------------
# Forward
# --------------------------------------------------------------------------

def aiimage_model_forward(x_nchw, params):
    """Forward pass matching aiimageModel.forward.  x_nchw: [B, C, H, W]."""
    B = x_nchw.shape[0]
    x_flat = x_nchw.reshape(B, -1)          # nn.Flatten() (contiguous NCHW)
    F = x_flat.shape[1]
    budget = _vmem_budget_bytes()

    if params["fused"]:
        w, b = params["w"], params["b"]
        out_cols = w.shape[1]
        x_flat = x_flat.astype(w.dtype)
        itemsize = jnp.dtype(w.dtype).itemsize
        tb, tk = _choose_tiles(B, F, out_cols, out_cols, itemsize, budget)
        grid = (pl.cdiv(B, tb), pl.cdiv(F, tk))

        return pl.pallas_call(
            _fused_linear_kernel,
            out_shape=jax.ShapeDtypeStruct((B, out_cols), jnp.float32),
            grid_spec=pltpu.PrefetchScalarGridSpec(
                num_scalar_prefetch=0,
                grid=grid,
                in_specs=[
                    # x tiles stream over batch and K (double-buffered DMA).
                    pl.BlockSpec((tb, tk), lambda i, k: (i, k)),
                    # Fused weight streams over K; bias stays put.
                    pl.BlockSpec((tk, out_cols), lambda i, k: (k, 0)),
                    pl.BlockSpec((1, out_cols), lambda i, k: (0, 0)),
                ],
                out_specs=pl.BlockSpec((tb, out_cols), lambda i, k: (i, 0)),
                scratch_shapes=[pltpu.VMEM((tb, out_cols), jnp.float32)],
            ),
            compiler_params=pltpu.CompilerParams(
                dimension_semantics=("parallel", "arbitrary"),
                vmem_limit_bytes=budget,
            ),
        )(x_flat, w, b)

    # ---- unfused path (wide output head) ----
    w1, b1, w2, b2 = params["w1"], params["b1"], params["w2"], params["b2"]
    hidden = w1.shape[1]
    out_cols = w2.shape[1]
    x_flat = x_flat.astype(w1.dtype)
    itemsize = jnp.dtype(w1.dtype).itemsize
    tb, tk = _choose_tiles(B, F, hidden, max(hidden, out_cols), itemsize, budget)
    grid = (pl.cdiv(B, tb), pl.cdiv(F, tk))

    return pl.pallas_call(
        _two_linear_kernel,
        out_shape=jax.ShapeDtypeStruct((B, out_cols), jnp.float32),
        grid_spec=pltpu.PrefetchScalarGridSpec(
            num_scalar_prefetch=0,
            grid=grid,
            in_specs=[
                pl.BlockSpec((tb, tk), lambda i, k: (i, k)),
                pl.BlockSpec((tk, hidden), lambda i, k: (k, 0)),
                pl.BlockSpec((1, hidden), lambda i, k: (0, 0)),
                pl.BlockSpec((hidden, out_cols), lambda i, k: (0, 0)),
                pl.BlockSpec((1, out_cols), lambda i, k: (0, 0)),
            ],
            out_specs=pl.BlockSpec((tb, out_cols), lambda i, k: (i, 0)),
            scratch_shapes=[pltpu.VMEM((tb, hidden), jnp.float32)],
        ),
        compiler_params=pltpu.CompilerParams(
            dimension_semantics=("parallel", "arbitrary"),
            vmem_limit_bytes=budget,
        ),
    )(x_flat, w1, b1, w2, b2)


# --------------------------------------------------------------------------
# Init + self-test
# --------------------------------------------------------------------------

def init_params(key, input_features, output_features):
    """Deterministic init mimicking nn.Linear's U(-1/sqrt(in), 1/sqrt(in))."""
    k1, k2, k3, k4 = jax.random.split(key, 4)
    bound1 = 1.0 / jnp.sqrt(jnp.float32(input_features))
    bound2 = 1.0 / jnp.sqrt(jnp.float32(5))
    w1 = jax.random.uniform(k1, (input_features, 5), jnp.float32, -bound1, bound1)
    b1 = jax.random.uniform(k2, (5,), jnp.float32, -bound1, bound1)
    w2 = jax.random.uniform(k3, (5, output_features), jnp.float32, -bound2, bound2)
    b2 = jax.random.uniform(k4, (output_features,), jnp.float32, -bound2, bound2)
    return w1, b1, w2, b2


if __name__ == "__main__":
    # Small shapes consistent with an image model: NCHW [2, 4, 16, 16]
    B, C, H, W = 2, 4, 16, 16
    input_features = C * H * W          # 1024
    output_features = 10

    key = jax.random.PRNGKey(0)
    kx, kp = jax.random.split(key)
    x = jax.random.normal(kx, (B, C, H, W), jnp.float32)
    w1, b1, w2, b2 = init_params(kp, input_features, output_features)

    # Pure-JAX reference of the original two-Linear forward semantics.
    x_flat = x.reshape(B, -1)
    ref = (x_flat @ w1 + b1) @ w2 + b2

    # Path 1: fused head (out_features=10 <= 128) — single streamed matmul.
    params_fused = prepare_params(w1, b1, w2, b2)        # hoisted, one-time
    out = jax.block_until_ready(aiimage_model_forward(x, params_fused))
    assert out.shape == (B, output_features)
    assert jnp.allclose(out, ref, atol=1e-4, rtol=1e-4), "fused path mismatch"

    # Path 2: force the unfused (wide-head) two-matmul kernel and verify it too.
    params_unfused = prepare_params(w1, b1, w2, b2, fuse_max_out=0)
    out2 = jax.block_until_ready(aiimage_model_forward(x, params_unfused))
    assert jnp.allclose(out2, ref, atol=1e-4, rtol=1e-4), "unfused path mismatch"

    print("KERNEL_OK")
</pallas_src>

<mosaic_0001>
module attributes {stable_mosaic.version = 11 : i64} {
  func.func @_fused_linear_kernel(%arg0: i32, %arg1: i32, %arg2: memref<2x1024xf32, #tpu.memory_space<vmem>>, %arg3: memref<1024x10xf32, #tpu.memory_space<vmem>>, %arg4: memref<1x10xf32, #tpu.memory_space<vmem>>, %arg5: memref<2x10xf32, #tpu.memory_space<vmem>>, %arg6: memref<2x10xf32, #tpu.memory_space<vmem>>) attributes {dimension_semantics = [#tpu.dimension_semantics<parallel>, #tpu.dimension_semantics<arbitrary>], iteration_bounds = array<i64: 1, 1>, scalar_prefetch = 0 : i64, scratch_operands = 1 : i64, tpu.core_type = #tpu.core_type<tc>, window_params = [{transform_indices = @transform_0, window_bounds = array<i64: 2, 1024>}, {transform_indices = @transform_1, window_bounds = array<i64: 1024, 10>}, {pipeline_mode = #tpu.pipeline_mode<synchronous>, transform_indices = @transform_2, window_bounds = array<i64: 1, 10>}, {transform_indices = @transform_3, window_bounds = array<i64: 2, 10>}]} {
    %c0_i32 = arith.constant 0 : i32
    %0 = arith.cmpi eq, %arg1, %c0_i32 : i32
    %1 = arith.extui %0 : i1 to i32
    %c0_i32_0 = arith.constant 0 : i32
    %2 = arith.cmpi ne, %1, %c0_i32_0 : i32
    scf.if %2 {
      %cst_10 = arith.constant 0.000000e+00 : f32
      %12 = vector.broadcast %cst_10 : f32 to vector<2x10xf32>
      %c0_11 = arith.constant 0 : index
      %c0_12 = arith.constant 0 : index
      %13 = vector.load %arg6[%c0_11, %c0_12] : memref<2x10xf32, #tpu.memory_space<vmem>>, vector<2x10xf32>
      tpu.vector_store %arg6[%c0_11, %c0_12], %12 {strides = array<i32>} : memref<2x10xf32, #tpu.memory_space<vmem>>, vector<2x10xf32>,
    } else {
    }
    %c0 = arith.constant 0 : index
    %c0_1 = arith.constant 0 : index
    %3 = vector.load %arg6[%c0, %c0_1] : memref<2x10xf32, #tpu.memory_space<vmem>>, vector<2x10xf32>
    %c0_2 = arith.constant 0 : index
    %c0_3 = arith.constant 0 : index
    %4 = vector.load %arg2[%c0_2, %c0_3] : memref<2x1024xf32, #tpu.memory_space<vmem>>, vector<2x1024xf32>
    %c0_4 = arith.constant 0 : index
    %c0_5 = arith.constant 0 : index
    %5 = vector.load %arg3[%c0_4, %c0_5] : memref<1024x10xf32, #tpu.memory_space<vmem>>, vector<1024x10xf32>
    %cst = arith.constant dense<0.000000e+00> : vector<2x10xf32>
    %6 = tpu.matmul %4, %5, %cst {dimension_numbers = #tpu.dot_dimension_numbers<[1], [0], [0], [1], [0, 0, 1, 1], [], []>} : vector<2x1024xf32>, vector<1024x10xf32>, vector<2x10xf32> -> vector<2x10xf32>
    %7 = arith.addf %3, %6 : vector<2x10xf32>
    %c0_6 = arith.constant 0 : index
    %c0_7 = arith.constant 0 : index
    %8 = vector.load %arg6[%c0_6, %c0_7] : memref<2x10xf32, #tpu.memory_space<vmem>>, vector<2x10xf32>
    tpu.vector_store %arg6[%c0_6, %c0_7], %7 {strides = array<i32>} : memref<2x10xf32, #tpu.memory_space<vmem>>, vector<2x10xf32>,
    %c0_i32_8 = arith.constant 0 : i32
    %9 = arith.cmpi eq, %arg1, %c0_i32_8 : i32
    %10 = arith.extui %9 : i1 to i32
    %c0_i32_9 = arith.constant 0 : i32
    %11 = arith.cmpi ne, %10, %c0_i32_9 : i32
    scf.if %11 {
      %c0_10 = arith.constant 0 : index
      %c0_11 = arith.constant 0 : index
      %12 = vector.load %arg6[%c0_10, %c0_11] : memref<2x10xf32, #tpu.memory_space<vmem>>, vector<2x10xf32>
      %c0_12 = arith.constant 0 : index
      %c0_13 = arith.constant 0 : index
      %13 = vector.load %arg4[%c0_12, %c0_13] : memref<1x10xf32, #tpu.memory_space<vmem>>, vector<1x10xf32>
      %14 = vector.broadcast %13 : vector<1x10xf32> to vector<2x10xf32>
      %15 = arith.addf %12, %14 : vector<2x10xf32>
      %c0_14 = arith.constant 0 : index
      %c0_15 = arith.constant 0 : index
      %16 = vector.load %arg5[%c0_14, %c0_15] : memref<2x10xf32, #tpu.memory_space<vmem>>, vector<2x10xf32>
      tpu.vector_store %arg5[%c0_14, %c0_15], %15 {strides = array<i32>} : memref<2x10xf32, #tpu.memory_space<vmem>>, vector<2x10xf32>,
    } else {
    }
    return
  }
  func.func @transform_0(%arg0: i32, %arg1: i32) -> (i32, i32) {
    %c0_i32 = arith.constant 0 : i32
    return %arg0, %arg1 : i32, i32
  }
  func.func @transform_1(%arg0: i32, %arg1: i32) -> (i32, i32) {
    %c0_i32 = arith.constant 0 : i32
    %c0_i32_0 = arith.constant 0 : i32
    return %arg1, %c0_i32 : i32, i32
  }
  func.func @transform_2(%arg0: i32, %arg1: i32) -> (i32, i32) {
    %c0_i32 = arith.constant 0 : i32
    %c0_i32_0 = arith.constant 0 : i32
    %c0_i32_1 = arith.constant 0 : i32
    return %c0_i32, %c0_i32_0 : i32, i32
  }
  func.func @transform_3(%arg0: i32, %arg1: i32) -> (i32, i32) {
    %c0_i32 = arith.constant 0 : i32
    %c0_i32_0 = arith.constant 0 : i32
    return %arg0, %c0_i32 : i32, i32
  }
}

</mosaic_0001>

<bundles_post_ra>
// kernel: tpu_custom_call.1
= control target key start
LH: loop header
LB: loop body
LE: loop exit
PB: predicated region body
PF: predicated region fallthrough
CT: control target
= control target key end

     0   :  { %s812_s0 = inlined_call_operand.vmem [shape: f32[2,1024], index: 0, kind: input, shape index: {}]   ;;  %s813_s1 = inlined_call_operand.vmem [shape: f32[1024,10], index: 1, kind: input, shape index: {}]   ;;  %s814_s2 = inlined_call_operand.vmem [shape: f32[1,10], index: 2, kind: input, shape index: {}]   ;;  %s815_s3 = inlined_call_operand.hbm [shape: f32[2,10], index: 3, kind: output, shape index: {}]  }
   0x1   :  { %v39_v0 = vld [vmem:[%s813_s1 + $0x78] sm:$0xff]  ;;  %v38_v2 = vld [vmem:[%s813_s1 + $0x70] sm:$0xff]  ;;  %v37_v6 = vld [vmem:[%s813_s1 + $0x68] sm:$0xff] }
   0x2   :  { %v71_v1 = vld [vmem:[%s813_s1 + $0x178] sm:$0xff]  ;;  %173 = vmatpush.msra.mxu0 %v39_v0  ;;  %v70_v4 = vld [vmem:[%s813_s1 + $0x170] sm:$0xff]  ;;  %v69_v8 = vld [vmem:[%s813_s1 + $0x168] sm:$0xff] }
   0x3   :  { %213 = vmatpush.msra.mxu2 %v71_v1  ;;  %v55_v3 = vld [vmem:[%s813_s1 + $0xf8] sm:$0xff]  ;;  %v54_v7 = vld [vmem:[%s813_s1 + $0xf0] sm:$0xff]  ;;  %v53_v10 = vld [vmem:[%s813_s1 + $0xe8] sm:$0xff] }
   0x4   :  { %v87_v5 = vld [vmem:[%s813_s1 + $0x1f8] sm:$0xff]  ;;  %193 = vmatpush.msra.mxu1 %v55_v3  ;;  %174 = vmatpush.msra.mxu0 %v38_v2  ;;  %v86_v9 = vld [vmem:[%s813_s1 + $0x1f0] sm:$0xff]  ;;  %v36_v11 = vld [vmem:[%s813_s1 + $0x60] sm:$0xff] }
   0x5   :  { %233 = vmatpush.msra.mxu3 %v87_v5  ;;  %214 = vmatpush.msra.mxu2 %v70_v4  ;;  %v68_v12 = vld [vmem:[%s813_s1 + $0x160] sm:$0xff]  ;;  %v85_v13 = vld [vmem:[%s813_s1 + $0x1e8] sm:$0xff]  ;;  %v35_v16 = vld [vmem:[%s813_s1 + $0x58] sm:$0xff] }
   0x6   :  { %194 = vmatpush.msra.mxu1 %v54_v7  ;;  %175 = vmatpush.msra.mxu0 %v37_v6  ;;  %v52_v14 = vld [vmem:[%s813_s1 + $0xe0] sm:$0xff]  ;;  %v67_v17 = vld [vmem:[%s813_s1 + $0x158] sm:$0xff]  ;;  %v34_v20 = vld [vmem:[%s813_s1 + $0x50] sm:$0xff] }
   0x7   :  { %234 = vmatpush.msra.mxu3 %v86_v9  ;;  %215 = vmatpush.msra.mxu2 %v69_v8  ;;  %v84_v15 = vld [vmem:[%s813_s1 + $0x1e0] sm:$0xff]  ;;  %v51_v18 = vld [vmem:[%s813_s1 + $0xd8] sm:$0xff]  ;;  %v66_v21 = vld [vmem:[%s813_s1 + $0x150] sm:$0xff] }
   0x8   :  { %195 = vmatpush.msra.mxu1 %v53_v10  ;;  %176 = vmatpush.msra.mxu0 %v36_v11  ;;  %v83_v19 = vld [vmem:[%s813_s1 + $0x1d8] sm:$0xff]  ;;  %v50_v22 = vld [vmem:[%s813_s1 + $0xd0] sm:$0xff]  ;;  %v33_v24 = vld [vmem:[%s813_s1 + $0x48] sm:$0xff] }
   0x9   :  { %235 = vmatpush.msra.mxu3 %v85_v13  ;;  %216 = vmatpush.msra.mxu2 %v68_v12  ;;  %v82_v23 = vld [vmem:[%s813_s1 + $0x1d0] sm:$0xff]  ;;  %v65_v25 = vld [vmem:[%s813_s1 + $0x148] sm:$0xff]  ;;  %v32_v28 = vld [vmem:[%s813_s1 + $0x40] sm:$0xff] }
   0xa   :  { %196 = vmatpush.msra.mxu1 %v52_v14  ;;  %177 = vmatpush.msra.mxu0 %v35_v16  ;;  %v49_v26 = vld [vmem:[%s813_s1 + $0xc8] sm:$0xff]  ;;  %v64_v29 = vld [vmem:[%s813_s1 + $0x140] sm:$0xff]  ;;  %v31_v32 = vld [vmem:[%s813_s1 + $0x38] sm:$0xff] }
   0xb   :  { %236 = vmatpush.msra.mxu3 %v84_v15  ;;  %217 = vmatpush.msra.mxu2 %v67_v17  ;;  %v81_v27 = vld [vmem:[%s813_s1 + $0x1c8] sm:$0xff]  ;;  %v48_v30 = vld [vmem:[%s813_s1 + $0xc0] sm:$0xff]  ;;  %v63_v33 = vld [vmem:[%s813_s1 + $0x138] sm:$0xff] }
   0xc   :  { %197 = vmatpush.msra.mxu1 %v51_v18  ;;  %178 = vmatpush.msra.mxu0 %v34_v20  ;;  %v80_v31 = vld [vmem:[%s813_s1 + $0x1c0] sm:$0xff]  ;;  %v47_v34 = vld [vmem:[%s813_s1 + $0xb8] sm:$0xff]  ;;  %v30_v36 = vld [vmem:[%s813_s1 + $0x30] sm:$0xff] }
   0xd   :  { %237 = vmatpush.msra.mxu3 %v83_v19  ;;  %218 = vmatpush.msra.mxu2 %v66_v21  ;;  %v79_v35 = vld [vmem:[%s813_s1 + $0x1b8] sm:$0xff]  ;;  %v62_v37 = vld [vmem:[%s813_s1 + $0x130] sm:$0xff]  ;;  %v29_v40 = vld [vmem:[%s813_s1 + $0x28] sm:$0xff] }
   0xe   :  { %198 = vmatpush.msra.mxu1 %v50_v22  ;;  %179 = vmatpush.msra.mxu0 %v33_v24  ;;  %v46_v38 = vld [vmem:[%s813_s1 + $0xb0] sm:$0xff]  ;;  %v61_v41 = vld [vmem:[%s813_s1 + $0x128] sm:$0xff]  ;;  %v28_v44 = vld [vmem:[%s813_s1 + $0x20] sm:$0xff] }
   0xf   :  { %238 = vmatpush.msra.mxu3 %v82_v23  ;;  %219 = vmatpush.msra.mxu2 %v65_v25  ;;  %v78_v39 = vld [vmem:[%s813_s1 + $0x1b0] sm:$0xff]  ;;  %v45_v42 = vld [vmem:[%s813_s1 + $0xa8] sm:$0xff]  ;;  %v60_v45 = vld [vmem:[%s813_s1 + $0x120] sm:$0xff] }
  0x10   :  { %199 = vmatpush.msra.mxu1 %v49_v26  ;;  %180 = vmatpush.msra.mxu0 %v32_v28  ;;  %v77_v43 = vld [vmem:[%s813_s1 + $0x1a8] sm:$0xff]  ;;  %v44_v46 = vld [vmem:[%s813_s1 + $0xa0] sm:$0xff]  ;;  %v27_v48 = vld [vmem:[%s813_s1 + $0x18] sm:$0xff] }
  0x11   :  { %239 = vmatpush.msra.mxu3 %v81_v27  ;;  %220 = vmatpush.msra.mxu2 %v64_v29  ;;  %v76_v47 = vld [vmem:[%s813_s1 + $0x1a0] sm:$0xff]  ;;  %v59_v49 = vld [vmem:[%s813_s1 + $0x118] sm:$0xff]  ;;  %v26_v52 = vld [vmem:[%s813_s1 + $0x10] sm:$0xff] }
  0x12   :  { %200 = vmatpush.msra.mxu1 %v48_v30  ;;  %181 = vmatpush.msra.mxu0 %v31_v32  ;;  %v43_v50 = vld [vmem:[%s813_s1 + $0x98] sm:$0xff]  ;;  %v58_v53 = vld [vmem:[%s813_s1 + $0x110] sm:$0xff]  ;;  %v25_v56 = vld [vmem:[%s813_s1 + $0x8] sm:$0xff] }
  0x13   :  { %240 = vmatpush.msra.mxu3 %v80_v31  ;;  %221 = vmatpush.msra.mxu2 %v63_v33  ;;  %v75_v51 = vld [vmem:[%s813_s1 + $0x198] sm:$0xff]  ;;  %v42_v54 = vld [vmem:[%s813_s1 + $0x90] sm:$0xff]  ;;  %v57_v57 = vld [vmem:[%s813_s1 + $0x108] sm:$0xff] }
  0x14   :  { %201 = vmatpush.msra.mxu1 %v47_v34  ;;  %182 = vmatpush.msra.mxu0 %v30_v36  ;;  %v74_v55 = vld [vmem:[%s813_s1 + $0x190] sm:$0xff]  ;;  %v41_v58 = vld [vmem:[%s813_s1 + $0x88] sm:$0xff]  ;;  %v24_v60 = vld [vmem:[%s813_s1] sm:$0xff] }
  0x15   :  { %241 = vmatpush.msra.mxu3 %v79_v35  ;;  %222 = vmatpush.msra.mxu2 %v62_v37  ;;  %v73_v59 = vld [vmem:[%s813_s1 + $0x188] sm:$0xff]  ;;  %v56_v61 = vld [vmem:[%s813_s1 + $0x100] sm:$0xff]  ;;  %v103_v62 = vld [vmem:[%s813_s1 + $0x278] sm:$0xff] }
  0x16   :  { %202 = vmatpush.msra.mxu1 %v46_v38  ;;  %183 = vmatpush.msra.mxu0 %v29_v40  ;;  %v135_v63 = vld [vmem:[%s813_s1 + $0x378] sm:$0xff]  ;;  %v40_v0 = vld [vmem:[%s813_s1 + $0x80] sm:$0xff]  ;;  %v102_v2 = vld [vmem:[%s813_s1 + $0x270] sm:$0xff] }
  0x17   :  { %242 = vmatpush.msra.mxu3 %v78_v39  ;;  %223 = vmatpush.msra.mxu2 %v61_v41  ;;  %v72_v1 = vld [vmem:[%s813_s1 + $0x180] sm:$0xff]  ;;  %v119_v3 = vld [vmem:[%s813_s1 + $0x2f8] sm:$0xff]  ;;  %v134_v4 = vld [vmem:[%s813_s1 + $0x370] sm:$0xff] }
  0x18   :  { %203 = vmatpush.msra.mxu1 %v45_v42  ;;  %184 = vmatpush.msra.mxu0 %v28_v44  ;;  %v151_v5 = vld [vmem:[%s813_s1 + $0x3f8] sm:$0xff]  ;;  %v101_v6 = vld [vmem:[%s813_s1 + $0x268] sm:$0xff]  ;;  %v118_v7 = vld [vmem:[%s813_s1 + $0x2f0] sm:$0xff] }
  0x19   :  { %243 = vmatpush.msra.mxu3 %v77_v43  ;;  %224 = vmatpush.msra.mxu2 %v60_v45  ;;  %v133_v8 = vld [vmem:[%s813_s1 + $0x368] sm:$0xff]  ;;  %v150_v9 = vld [vmem:[%s813_s1 + $0x3f0] sm:$0xff]  ;;  %v100_v10 = vld [vmem:[%s813_s1 + $0x260] sm:$0xff] }
  0x1a   :  { %204 = vmatpush.msra.mxu1 %v44_v46  ;;  %185 = vmatpush.msra.mxu0 %v27_v48  ;;  %v117_v11 = vld [vmem:[%s813_s1 + $0x2e8] sm:$0xff]  ;;  %v22_v12 = vld [vmem:[%s812_s0] sm:$0xff]  ;;  %v99_v15 = vld [vmem:[%s813_s1 + $0x258] sm:$0xff] }
  0x1b   :  { %244 = vmatpush.msra.mxu3 %v76_v47  ;;  %225 = vmatpush.msra.mxu2 %v59_v49  ;;  %v132_v13 = vld [vmem:[%s813_s1 + $0x360] sm:$0xff]  ;;  %v149_v14 = vld [vmem:[%s813_s1 + $0x3e8] sm:$0xff]  ;;  %154 = vst [vmem:[#allocation1] ss:$4 sm:$0xff] %v22_v12  ;;  %v131_v17 = vld [vmem:[%s813_s1 + $0x358] sm:$0xff] }
  0x1c   :  { %205 = vmatpush.msra.mxu1 %v43_v50  ;;  %186 = vmatpush.msra.mxu0 %v26_v52  ;;  %v116_v16 = vld [vmem:[%s813_s1 + $0x2e0] sm:$0xff]  ;;  %v98_v19 = vld [vmem:[%s813_s1 + $0x250] sm:$0xff]  ;;  %v115_v20 = vld [vmem:[%s813_s1 + $0x2d8] sm:$0xff] }
  0x1d   :  { %245 = vmatpush.msra.mxu3 %v75_v51  ;;  %226 = vmatpush.msra.mxu2 %v58_v53  ;;  %v148_v18 = vld [vmem:[%s813_s1 + $0x3e0] sm:$0xff]  ;;  %v130_v21 = vld [vmem:[%s813_s1 + $0x350] sm:$0xff]  ;;  %v147_v22 = vld [vmem:[%s813_s1 + $0x3d8] sm:$0xff] }
  0x1e   :  { %206 = vmatpush.msra.mxu1 %v42_v54  ;;  %187 = vmatpush.msra.mxu0 %v25_v56  ;;  %v97_v23 = vld [vmem:[%s813_s1 + $0x248] sm:$0xff]  ;;  %v114_v24 = vld [vmem:[%s813_s1 + $0x2d0] sm:$0xff]  ;;  %v96_v28 = vld [vmem:[%s813_s1 + $0x240] sm:$0xff] }
  0x1f   :  { %246 = vmatpush.msra.mxu3 %v74_v55  ;;  %227 = vmatpush.msra.mxu2 %v57_v57  ;;  %v129_v25 = vld [vmem:[%s813_s1 + $0x348] sm:$0xff]  ;;  %v146_v26 = vld [vmem:[%s813_s1 + $0x3d0] sm:$0xff]  ;;  %v128_v30 = vld [vmem:[%s813_s1 + $0x340] sm:$0xff] }
  0x20   :  { %207 = vmatpush.msra.mxu1 %v41_v58  ;;  %188 = vmatpush.msra.mxu0 %v24_v60  ;;  %v23_v27 = vld [vmem:[%s812_s0 + $0x8] sm:$0xff]  ;;  %v95_v32 = vld [vmem:[%s813_s1 + $0x238] sm:$0xff]  ;;  %v112_v33 = vld [vmem:[%s813_s1 + $0x2c0] sm:$0xff] }
  0x21   :  { %247 = vmatpush.msra.mxu3 %v73_v59  ;;  %228 = vmatpush.msra.mxu2 %v56_v61  ;;  %v113_v29 = vld [vmem:[%s813_s1 + $0x2c8] sm:$0xff]  ;;  %156 = vst [vmem:[#allocation1 + $0x20] ss:$4 sm:$0xff] %v23_v27 }
  0x22   :  { %253 = vmatpush.msrb.mxu0 %v103_v62  ;;  %208 = vmatpush.msra.mxu1 %v40_v0  ;;  %v145_v31 = vld [vmem:[%s813_s1 + $0x3c8] sm:$0xff] }
  0x23   :  { %293 = vmatpush.msrb.mxu2 %v135_v63  ;;  %248 = vmatpush.msra.mxu3 %v72_v1 }
  0x24   :  { %254 = vmatpush.msrb.mxu0 %v102_v2  ;;  %273 = vmatpush.msrb.mxu1 %v119_v3 }
  0x25   :  { %294 = vmatpush.msrb.mxu2 %v134_v4  ;;  %313 = vmatpush.msrb.mxu3 %v151_v5 }
  0x26   :  { %255 = vmatpush.msrb.mxu0 %v101_v6  ;;  %274 = vmatpush.msrb.mxu1 %v118_v7 }
  0x27   :  { %295 = vmatpush.msrb.mxu2 %v133_v8  ;;  %314 = vmatpush.msrb.mxu3 %v150_v9 }
  0x28   :  { %256 = vmatpush.msrb.mxu0 %v100_v10  ;;  %275 = vmatpush.msrb.mxu1 %v117_v11 }
  0x29   :  { %296 = vmatpush.msrb.mxu2 %v132_v13  ;;  %315 = vmatpush.msrb.mxu3 %v149_v14 }
  0x2a   :  { %257 = vmatpush.msrb.mxu0 %v99_v15  ;;  %276 = vmatpush.msrb.mxu1 %v116_v16 }
  0x2b   :  { %297 = vmatpush.msrb.mxu2 %v131_v17  ;;  %316 = vmatpush.msrb.mxu3 %v148_v18 }
  0x2c   :  { %258 = vmatpush.msrb.mxu0 %v98_v19  ;;  %277 = vmatpush.msrb.mxu1 %v115_v20 }
  0x2d   :  { %298 = vmatpush.msrb.mxu2 %v130_v21  ;;  %317 = vmatpush.msrb.mxu3 %v147_v22 }
  0x2e   :  { %259 = vmatpush.msrb.mxu0 %v97_v23  ;;  %278 = vmatpush.msrb.mxu1 %v114_v24 }
  0x2f   :  { %299 = vmatpush.msrb.mxu2 %v129_v25  ;;  %318 = vmatpush.msrb.mxu3 %v146_v26 }
  0x30   :  { %8 = vsyncpa [#allocation4], 0  ;;  %260 = vmatpush.msrb.mxu0 %v96_v28  ;;  %279 = vmatpush.msrb.mxu1 %v113_v29  ;;  %v127_v34 = vld [vmem:[%s813_s1 + $0x338] sm:$0xff]  ;;  %v144_v35 = vld [vmem:[%s813_s1 + $0x3c0] sm:$0xff]  ;;  %vm19_vm0 = vcmask 74752   ;;  %v391_v10 = vmov 0.0  }
  0x31   :  { %300 = vmatpush.msrb.mxu2 %v128_v30  ;;  %319 = vmatpush.msrb.mxu3 %v145_v31  ;;  %v94_v36 = vld [vmem:[%s813_s1 + $0x230] sm:$0xff]  ;;  %v111_v37 = vld [vmem:[%s813_s1 + $0x2b8] sm:$0xff]  ;;  %v93_v40 = vld [vmem:[%s813_s1 + $0x228] sm:$0xff]  ;;  %20 = vst.msk [vmem:[#allocation2] sm:$0x3] %vm19_vm0, %v391_v10  ;;  %s392_s27 = smov [#allocation3]  }
  0x32   :  { %261 = vmatpush.msrb.mxu0 %v95_v32  ;;  %280 = vmatpush.msrb.mxu1 %v112_v33  ;;  %v126_v38 = vld [vmem:[%s813_s1 + $0x330] sm:$0xff]  ;;  %v143_v39 = vld [vmem:[%s813_s1 + $0x3b8] sm:$0xff]  ;;  %v125_v42 = vld [vmem:[%s813_s1 + $0x328] sm:$0xff]  ;;  %s351_s28 = sshll.u32 %s392_s27, 4  ;;  %s353_s4 = sshll.u32 %s815_s3, 4  ;;  %s352_s28 = int_to_ptr.vmem [resolvable:$true] %s351_s28  ;;  %s354_s4 = int_to_ptr.hbm [resolvable:$true] %s353_s4 }
  0x33   :  { %301 = vmatpush.msrb.mxu2 %v127_v34  ;;  %320 = vmatpush.msrb.mxu3 %v144_v35  ;;  %v110_v41 = vld [vmem:[%s813_s1 + $0x2b0] sm:$0xff]  ;;  %v92_v45 = vld [vmem:[%s813_s1 + $0x220] sm:$0xff]  ;;  %v109_v46 = vld [vmem:[%s813_s1 + $0x2a8] sm:$0xff] }
  0x34   :  { %262 = vmatpush.msrb.mxu0 %v94_v36  ;;  %281 = vmatpush.msrb.mxu1 %v111_v37  ;;  %v142_v43 = vld [vmem:[%s813_s1 + $0x3b0] sm:$0xff]  ;;  %v124_v47 = vld [vmem:[%s813_s1 + $0x320] sm:$0xff]  ;;  %v141_v48 = vld [vmem:[%s813_s1 + $0x3a8] sm:$0xff] }
  0x35   :  { %302 = vmatpush.msrb.mxu2 %v126_v38  ;;  %321 = vmatpush.msrb.mxu3 %v143_v39  ;;  %v159_v44 = vld.sshfl [vmem:[#allocation1 + $0x10] sm:$0xff pattern:$0x73625140]  ;;  %v157_v49 = vld.sshfl [vmem:[#allocation1] sm:$0xff pattern:$0x73625140] }
  0x36   :  { %263 = vmatpush.msrb.mxu0 %v93_v40  ;;  %282 = vmatpush.msrb.mxu1 %v110_v41  ;;  %v160_v50 = vld.sshfl [vmem:[#allocation1 + $0x18] sm:$0xff pattern:$0x73625140]  ;;  %v108_v52 = vld [vmem:[%s813_s1 + $0x2a0] sm:$0xff]  ;;  %v90_v56 = vld [vmem:[%s813_s1 + $0x210] sm:$0xff] }
  0x37   :  { %303 = vmatpush.msrb.mxu2 %v125_v42  ;;  %322 = vmatpush.msrb.mxu3 %v142_v43  ;;  %v91_v51 = vld [vmem:[%s813_s1 + $0x218] sm:$0xff]  ;;  %v140_v54 = vld [vmem:[%s813_s1 + $0x3a0] sm:$0xff]  ;;  %v158_v55 = vld.sshfl [vmem:[#allocation1 + $0x8] sm:$0xff pattern:$0x73625140] }
  0x38   :  { %229 = vmatmul.f32.vlgmr.msra.gmra.mxu2 %v159_v44  ;;  %264 = vmatpush.msrb.mxu0 %v92_v45  ;;  %v123_v53 = vld [vmem:[%s813_s1 + $0x318] sm:$0xff]  ;;  %v122_v58 = vld [vmem:[%s813_s1 + $0x310] sm:$0xff]  ;;  %v89_v60 = vld [vmem:[%s813_s1 + $0x208] sm:$0xff] }
  0x39   :  { %283 = vmatpush.msrb.mxu1 %v109_v46  ;;  %304 = vmatpush.msrb.mxu2 %v124_v47  ;;  %v107_v57 = vld [vmem:[%s813_s1 + $0x298] sm:$0xff]  ;;  %v106_v61 = vld [vmem:[%s813_s1 + $0x290] sm:$0xff]  ;;  %v121_v62 = vld [vmem:[%s813_s1 + $0x308] sm:$0xff] }
  0x3a   :  { %323 = vmatpush.msrb.mxu3 %v141_v48  ;;  %189 = vmatmul.f32.vlgmr.msra.gmra.mxu0 %v157_v49  ;;  %v139_v59 = vld [vmem:[%s813_s1 + $0x398] sm:$0xff]  ;;  %v138_v63 = vld [vmem:[%s813_s1 + $0x390] sm:$0xff]  ;;  %v88_v0 = vld [vmem:[%s813_s1 + $0x200] sm:$0xff] }
  0x3b   :  { %249 = vmatmul.f32.vlgmr.msra.gmra.mxu3 %v160_v50  ;;  %265 = vmatpush.msrb.mxu0 %v91_v51  ;;  %v105_v1 = vld [vmem:[%s813_s1 + $0x288] sm:$0xff]  ;;  %v120_v2 = vld [vmem:[%s813_s1 + $0x300] sm:$0xff]  ;;  %v163_v5 = vld.sshfl [vmem:[#allocation1 + $0x30] sm:$0xff pattern:$0x73625140] }
  0x3c   :  { %284 = vmatpush.msrb.mxu1 %v108_v52  ;;  %305 = vmatpush.msrb.mxu2 %v123_v53  ;;  %v137_v3 = vld [vmem:[%s813_s1 + $0x388] sm:$0xff]  ;;  %v161_v4 = vld.sshfl [vmem:[#allocation1 + $0x20] sm:$0xff pattern:$0x73625140] }
  0x3d   :  { %324 = vmatpush.msrb.mxu3 %v140_v54  ;;  %209 = vmatmul.f32.vlgmr.msra.gmra.mxu1 %v158_v55  ;;  %v104_v6 = vld [vmem:[%s813_s1 + $0x280] sm:$0xff]  ;;  %v162_v8 = vld.sshfl [vmem:[#allocation1 + $0x28] sm:$0xff pattern:$0x73625140] }
  0x3e   :  { %266 = vmatpush.msrb.mxu0 %v90_v56  ;;  %285 = vmatpush.msrb.mxu1 %v107_v57  ;;  %v136_v7 = vld [vmem:[%s813_s1 + $0x380] sm:$0xff]  ;;  %v164_v9 = vld.sshfl [vmem:[#allocation1 + $0x38] sm:$0xff pattern:$0x73625140]  ;;  %v21_v24 = vld [vmem:[#allocation2] sm:$0x3] }
  0x3f   :  { %306 = vmatpush.msrb.mxu2 %v122_v58  ;;  %325 = vmatpush.msrb.mxu3 %v139_v59  ;;  %v364_v28 = vld [vmem:[%s814_s2] ss:$0 sm:$0xff] }
  0x40   :  { %267 = vmatpush.msrb.mxu0 %v89_v60  ;;  %286 = vmatpush.msrb.mxu1 %v106_v61 }
  0x41   :  { %307 = vmatpush.msrb.mxu2 %v121_v62  ;;  %326 = vmatpush.msrb.mxu3 %v138_v63 }
  0x42   :  { %268 = vmatpush.msrb.mxu0 %v88_v0  ;;  %287 = vmatpush.msrb.mxu1 %v105_v1 }
  0x43   :  { %308 = vmatpush.msrb.mxu2 %v120_v2  ;;  %327 = vmatpush.msrb.mxu3 %v137_v3 }
  0x44   :  { %269 = vmatmul.f32.vlgmr.msrb.gmra.mxu0 %v161_v4  ;;  %309 = vmatmul.f32.vlgmr.msrb.gmra.mxu2 %v163_v5 }
  0x45   :  { %288 = vmatpush.msrb.mxu1 %v104_v6  ;;  %328 = vmatpush.msrb.mxu3 %v136_v7 }
  0x46   :  { %289 = vmatmul.f32.vlgmr.msrb.gmra.mxu1 %v162_v8  ;;  %329 = vmatmul.f32.vlgmr.msrb.gmra.mxu3 %v164_v9 }
  0xb7   :  { %v190_v11 = vpop.f32.mrf.mxu0 }
  0xba   :  { %v210_v12 = vpop.f32.mrf.mxu1 }
  0xbb   :  { %v211_v13 = vadd.f32 %v210_v12, %v190_v11  ;;  %v230_v14 = vpop.f32.mrf.mxu2 }
  0xbd   :  { %v231_v15 = vadd.f32 %v230_v14, %v211_v13 }
  0xbe   :  { %v250_v16 = vpop.f32.mrf.mxu3 }
  0xbf   :  { %v251_v17 = vadd.f32 %v250_v16, %v231_v15 }
  0xc1   :  { %v270_v18 = vpop.f32.mrf.mxu0 }
  0xc2   :  { %v271_v19 = vadd.f32 %v270_v18, %v251_v17 }
  0xc3   :  { %v290_v20 = vpop.f32.mrf.mxu1 }
  0xc4   :  { %v291_v21 = vadd.f32 %v290_v20, %v271_v19 }
  0xc7   :  { %v310_v22 = vpop.f32.mrf.mxu2 }
  0xc8   :  { %v311_v23 = vadd.f32 %v310_v22, %v291_v21 }
  0xc9   :  { %v330_v25 = vpop.f32.mrf.mxu3 }
  0xca   :  { %v331_v26 = vadd.f32 %v330_v25, %v311_v23 }
  0xcc   :  { %v333_v27 = vadd.f32 %v331_v26, %v21_v24 }
  0xce   :  { %335 = vst.msk [vmem:[#allocation2] sm:$0x3] %vm19_vm0, %v333_v27 }
  0xd5   :  { %v339_v29 = vld [vmem:[#allocation2] sm:$0x3] }
  0xd6   :  { %v344_v30 = vadd.f32 %v364_v28, %v339_v29 }
  0xd8   :  { %345 = vst.msk [vmem:[#allocation3] sm:$0x3] %vm19_vm0, %v344_v30 }
  0xd9   :  { %356 = dma.vmem_to_hbm [thread:$0]  %s352_s28, 32, %s354_s4, [#allocation4]  }
  0xda   :  { %389 = dma.done.wait [#allocation4], 32  }
  0xdb   :  { %390 = vsyncadd [#allocation4], 4294967264 }
  0xdc   :  { %361 = vsyncpa [#allocation4], 1 }

</bundles_post_ra>
